<compile_context>
chip_gen: v5e
topology: v5e:2x2
jax: 0.10.0
libtpu: 0.0.40
codegen_flags: <defaults>
</compile_context>

<pallas_src>
import functools

import jax
import jax.numpy as jnp
from jax.experimental import pallas as pl
from jax.experimental.pallas import tpu as pltpu


def _ca_kernel(w_ref, x_ref, o_ref, *, inv_hw, k):
    # w_ref : (k,) f32 conv taps in SMEM (scalar prefetch).
    # x_ref / o_ref : (1, C, HW) blocks in the caller's dtype.
    x = x_ref[0]                                   # (C, HW)
    c = x.shape[0]
    pad = (k - 1) // 2

    # Global average pool over the (lane) spatial axis, accumulated in f32.
    pooled = jnp.sum(x.astype(jnp.float32), axis=-1, keepdims=True) * inv_hw   # (C, 1)

    # Conv1d(1,1,k,pad,bias=False) across channels == banded (C,C) matrix
    # times the pooled vector.  The band is built from iota compares on the
    # VPU; out-of-range source columns are simply absent, which reproduces
    # the conv's zero padding at the channel ends.
    i_idx = jax.lax.broadcasted_iota(jnp.int32, (c, c), 0)   # dest channel (sublane)
    j_idx = jax.lax.broadcasted_iota(jnp.int32, (c, c), 1)   # src  channel (lane)
    band = jnp.zeros((c, c), jnp.float32)
    for t in range(k):                              # k is tiny & static -> unrolled
        band = band + w_ref[t] * (j_idx == i_idx + (t - pad)).astype(jnp.float32)

    gate = jax.nn.sigmoid(
        jnp.dot(band, pooled, preferred_element_type=jnp.float32))             # (C, 1)

    # Broadcast-scale the tile in the native dtype (lane-dense store).
    o_ref[0] = (x * gate.astype(x.dtype)).astype(o_ref.dtype)


def ca_layer_pallas(x_nchw, conv_w):
    """ECA channel attention.  x_nchw: (B,C,H,W); conv_w: (1,1,k) Conv1d weight."""
    b, c, h, w = x_nchw.shape
    hw = h * w
    dtype = x_nchw.dtype
    itemsize = jnp.dtype(dtype).itemsize
    k = int(conv_w.size)
    assert k % 2 == 1, "ca_layer expects an odd kernel size"

    # (B,C,H,W) -> (B,C,HW) is a free metadata reshape (contiguous dims).
    x = x_nchw.reshape(b, c, hw)
    w_taps = conv_w.reshape(k).astype(jnp.float32)

    # VMEM budget: in + out blocks double-buffered, rounded up to the hardware
    # (sublane, 128) tiling, plus slack for the small band / pool temporaries.
    sub = {4: 8, 2: 16, 1: 32}.get(itemsize, 8)
    c_t = ((c + sub - 1) // sub) * sub
    hw_t = ((hw + 127) // 128) * 128
    tile_bytes = c_t * hw_t * itemsize
    band_bytes = c_t * (((c + 127) // 128) * 128) * 4
    vmem_limit = int(min(100 * 1024 * 1024,
                         max(8 * 1024 * 1024,
                             4 * tile_bytes + 2 * band_bytes + (2 << 20))))

    kernel = functools.partial(_ca_kernel, inv_hw=1.0 / float(hw), k=k)

    # TODO(synk): for very large C*HW (single-batch block > ~24 MiB) switch to
    # an HW-chunked two-pass (pool then scale) variant; not needed at the
    # shapes this module is used with.
    out = pl.pallas_call(
        kernel,
        out_shape=jax.ShapeDtypeStruct((b, c, hw), dtype),
        grid_spec=pltpu.PrefetchScalarGridSpec(
            num_scalar_prefetch=1,          # conv taps -> SMEM
            grid=(b,),
            in_specs=[
                # Block dims equal the full (C, HW) extents -> no host-side
                # padding or output slicing needed (Mosaic pads internally).
                pl.BlockSpec((1, c, hw), lambda i, w_sm: (i, 0, 0)),
            ],
            out_specs=pl.BlockSpec((1, c, hw), lambda i, w_sm: (i, 0, 0)),
        ),
        compiler_params=pltpu.CompilerParams(
            dimension_semantics=("parallel",),   # shard batch across TCs on v7x
            vmem_limit_bytes=vmem_limit,
        ),
    )(w_taps, x)

    return out.reshape(b, c, h, w)


def ca_layer_ref(x, conv_w):
    """Pure-JAX reference matching the PyTorch forward."""
    k = int(conv_w.size)
    pad = (k - 1) // 2
    wt = conv_w.reshape(k).astype(jnp.float32)
    c = x.shape[1]
    m = x.astype(jnp.float32).mean(axis=(2, 3))            # (B, C) global avg pool
    mp = jnp.pad(m, ((0, 0), (pad, pad)))                  # zero pad channels
    y = sum(wt[t] * mp[:, t:t + c] for t in range(k))
    y = jax.nn.sigmoid(y)
    return (x.astype(jnp.float32) * y[:, :, None, None]).astype(x.dtype)


if __name__ == "__main__":
    key = jax.random.PRNGKey(0)
    kx, kw = jax.random.split(key)

    B, C, H, W = 2, 8, 16, 16
    x = jax.random.normal(kx, (B, C, H, W), dtype=jnp.float32)

    # Conv1d(1, 1, kernel_size=3, bias=False) weight: shape (1, 1, 3).
    bound = 1.0 / jnp.sqrt(3.0)
    conv_w = jax.random.uniform(kw, (1, 1, 3), dtype=jnp.float32,
                                minval=-bound, maxval=bound)

    out = jax.block_until_ready(ca_layer_pallas(x, conv_w))

    ref = ca_layer_ref(x, conv_w)
    assert out.shape == (B, C, H, W)
    assert out.dtype == x.dtype
    assert jnp.allclose(out, ref, atol=1e-5, rtol=1e-5), "mismatch vs reference"

    print("KERNEL_OK")
</pallas_src>

<mosaic_0001>
module attributes {stable_mosaic.version = 11 : i64} {
  func.func @_ca_kernel(%arg0: i32, %arg1: memref<3xf32, #tpu.memory_space<smem>>, %arg2: memref<1x8x256xf32, #tpu.memory_space<vmem>>, %arg3: memref<1x8x256xf32, #tpu.memory_space<vmem>>) attributes {dimension_semantics = [#tpu.dimension_semantics<parallel>], iteration_bounds = array<i64: 2>, scalar_prefetch = 1 : i64, scratch_operands = 0 : i64, tpu.core_type = #tpu.core_type<tc>, window_params = [{transform_indices = @transform_0, window_bounds = array<i64: 1, 8, 256>}, {transform_indices = @transform_1, window_bounds = array<i64: 1, 8, 256>}]} {
    %c0 = arith.constant 0 : index
    %c0_0 = arith.constant 0 : index
    %c0_1 = arith.constant 0 : index
    %0 = vector.load %arg2[%c0, %c0_0, %c0_1] : memref<1x8x256xf32, #tpu.memory_space<vmem>>, vector<1x8x256xf32>
    %1 = vector.shape_cast %0 : vector<1x8x256xf32> to vector<8x256xf32>
    %cst = arith.constant dense<0.000000e+00> : vector<8xf32>
    %2 = vector.multi_reduction <add>, %1, %cst [1] : vector<8x256xf32> to vector<8xf32>
    %3 = vector.shape_cast %2 : vector<8xf32> to vector<8x1xf32>
    %cst_2 = arith.constant 3.906250e-03 : f32
    %4 = vector.broadcast %cst_2 : f32 to vector<8x1xf32>
    %5 = arith.mulf %3, %4 : vector<8x1xf32>
    %6 = tpu.iota {dimensions = array<i32: 0>} : vector<8x8xi32>
    %7 = tpu.iota {dimensions = array<i32: 1>} : vector<8x8xi32>
    %cst_3 = arith.constant 0.000000e+00 : f32
    %8 = vector.broadcast %cst_3 : f32 to vector<8x8xf32>
    %c0_4 = arith.constant 0 : index
    %9 = memref.load %arg1[%c0_4] : memref<3xf32, #tpu.memory_space<smem>>
    %c-1_i32 = arith.constant -1 : i32
    %10 = vector.broadcast %c-1_i32 : i32 to vector<8x8xi32>
    %11 = arith.addi %6, %10 : vector<8x8xi32>
    %12 = arith.cmpi eq, %7, %11 : vector<8x8xi32>
    %13 = arith.extui %12 : vector<8x8xi1> to vector<8x8xi32>
    %14 = arith.sitofp %13 : vector<8x8xi32> to vector<8x8xf32>
    %15 = vector.broadcast %9 : f32 to vector<8x8xf32>
    %16 = arith.mulf %15, %14 : vector<8x8xf32>
    %17 = arith.addf %8, %16 : vector<8x8xf32>
    %c1 = arith.constant 1 : index
    %18 = memref.load %arg1[%c1] : memref<3xf32, #tpu.memory_space<smem>>
    %c0_i32 = arith.constant 0 : i32
    %19 = vector.broadcast %c0_i32 : i32 to vector<8x8xi32>
    %20 = arith.addi %6, %19 : vector<8x8xi32>
    %21 = arith.cmpi eq, %7, %20 : vector<8x8xi32>
    %22 = arith.extui %21 : vector<8x8xi1> to vector<8x8xi32>
    %23 = arith.sitofp %22 : vector<8x8xi32> to vector<8x8xf32>
    %24 = vector.broadcast %18 : f32 to vector<8x8xf32>
    %25 = arith.mulf %24, %23 : vector<8x8xf32>
    %26 = arith.addf %17, %25 : vector<8x8xf32>
    %c2 = arith.constant 2 : index
    %27 = memref.load %arg1[%c2] : memref<3xf32, #tpu.memory_space<smem>>
    %c1_i32 = arith.constant 1 : i32
    %28 = vector.broadcast %c1_i32 : i32 to vector<8x8xi32>
    %29 = arith.addi %6, %28 : vector<8x8xi32>
    %30 = arith.cmpi eq, %7, %29 : vector<8x8xi32>
    %31 = arith.extui %30 : vector<8x8xi1> to vector<8x8xi32>
    %32 = arith.sitofp %31 : vector<8x8xi32> to vector<8x8xf32>
    %33 = vector.broadcast %27 : f32 to vector<8x8xf32>
    %34 = arith.mulf %33, %32 : vector<8x8xf32>
    %35 = arith.addf %26, %34 : vector<8x8xf32>
    %cst_5 = arith.constant dense<0.000000e+00> : vector<8x1xf32>
    %36 = tpu.matmul %35, %5, %cst_5 {dimension_numbers = #tpu.dot_dimension_numbers<[1], [0], [0], [1], [0, 0, 1, 1], [], []>} : vector<8x8xf32>, vector<8x1xf32>, vector<8x1xf32> -> vector<8x1xf32>
    %37 = arith.negf %36 : vector<8x1xf32>
    %38 = math.exp %37 : vector<8x1xf32>
    %cst_6 = arith.constant 1.000000e+00 : f32
    %39 = vector.broadcast %cst_6 : f32 to vector<8x1xf32>
    %40 = arith.addf %39, %38 : vector<8x1xf32>
    %41 = arith.divf %39, %40 : vector<8x1xf32>
    %42 = vector.broadcast %41 : vector<8x1xf32> to vector<8x256xf32>
    %43 = arith.mulf %1, %42 : vector<8x256xf32>
    %c0_7 = arith.constant 0 : index
    %c0_8 = arith.constant 0 : index
    %c0_9 = arith.constant 0 : index
    %44 = vector.load %arg3[%c0_7, %c0_8, %c0_9] : memref<1x8x256xf32, #tpu.memory_space<vmem>>, vector<1x8x256xf32>
    %45 = vector.shape_cast %44 : vector<1x8x256xf32> to vector<8x256xf32>
    %46 = vector.shape_cast %43 : vector<8x256xf32> to vector<1x8x256xf32>
    tpu.vector_store %arg3[%c0_7, %c0_8, %c0_9], %46 {strides = array<i32>} : memref<1x8x256xf32, #tpu.memory_space<vmem>>, vector<1x8x256xf32>,
    return
  }
  func.func @transform_0(%arg0: i32, %arg1: memref<3xf32, #tpu.memory_space<smem>>) -> (i32, i32, i32) {
    %c0_i32 = arith.constant 0 : i32
    %c0_i32_0 = arith.constant 0 : i32
    %c0_i32_1 = arith.constant 0 : i32
    return %arg0, %c0_i32, %c0_i32_0 : i32, i32, i32
  }
  func.func @transform_1(%arg0: i32, %arg1: memref<3xf32, #tpu.memory_space<smem>>) -> (i32, i32, i32) {
    %c0_i32 = arith.constant 0 : i32
    %c0_i32_0 = arith.constant 0 : i32
    %c0_i32_1 = arith.constant 0 : i32
    return %arg0, %c0_i32, %c0_i32_0 : i32, i32, i32
  }
}

</mosaic_0001>

<bundles_post_ra>
// kernel: tpu_custom_call.1
= control target key start
LH: loop header
LB: loop body
LE: loop exit
PB: predicated region body
PF: predicated region fallthrough
CT: control target
= control target key end

     0   :  { %s505_s12 = smov [#allocation3]   ;;  %s657_s0 = inlined_call_operand.hbm [shape: f32[3], index: 0, kind: input, shape index: {}]   ;;  %s658_s1 = inlined_call_operand.hbm [shape: f32[2,8,256], index: 1, kind: input, shape index: {}]   ;;  %s659_s2 = inlined_call_operand.hbm [shape: f32[2,8,256], index: 2, kind: output, shape index: {}]  }
   0x1   :  { %s8_s11 = sshll.u32 %s657_s0, 4  ;;  %s9_s11 = int_to_ptr.hbm [resolvable:$true] %s8_s11 }
   0x2   :  { %11 = dma.hbm_to_smem %s9_s11, 16, %s505_s12, [#allocation2] }
   0x3   :  { %479 = dma.done.wait [#allocation2], 16 }
   0x4   :  { %480 = vsyncadd [#allocation2], 4294967280 }
   0x5   :  { %14 = sfence }
   0x6   :  { %15 = vsyncpa [#allocation5], 0 }
   0x7   :  { %17 = vsyncpa [#allocation5 + $0x1], 0 }
   0x8   :  { %18 = vsyncpa [#allocation6], 0 }
   0x9   :  { %20 = vsyncpa [#allocation6 + $0x1], 0  ;;  %s526_s13 = smov 0   ;;  %s528_s14 = smov 0  }
   0xa   :  { %s530_s15 = smov 0   ;;  %s532_s16 = smov 0  }
   0xb LB: > { %s547_s0 = sadd.s32 4294967295, %s503_s16   ;;  %s316_s17 = sadd.s32 4294967294, %s503_s16   ;;  %s503_s16 = sphi %s532_s16, %s669_s16   ;;  %s499_s15 = sphi %s530_s15, %s668_s15   ;;  %s495_s14 = sphi %s528_s14, %s667_s14   ;;  %s491_s13 = sphi %s526_s13, %s666_s13  }
   0xc   : > { %s551_s18 = sadd.s32 1, %s503_s16   ;;  %s33_s19 = sadd.s32 1, %s499_s15 }
   0xd   : > { %s30_s20 = ssub.s32 %s503_s16, %s551_s18  ;;  %p40_p0 = scmp.ne.s32.totalorder %s499_s15, %s495_s14 }
   0xe   : > { %p31_p1 = scmp.eq.s32.totalorder %s30_s20, 0  ;;  %p41_p2 = scmp.eq.s32.totalorder %s503_s16, 0 }
   0xf   : > { %p46_p3 = scmp.ne.s32.totalorder %s495_s14, %s491_s13  ;;  %p47_p4 = scmp.eq.s32.totalorder %s547_s0, 0 }
  0x10   : > { %s563_s21 = scalar_select %p31_p1, %s499_s15, %s33_s19  }
  0x11   : > { %p565_p5 = por %p41_p2, %p40_p0  ;;  %p569_p6 = por %p47_p4, %p46_p3 }
  0x12   : > { %p70_p7 = scmp.eq.s32.totalorder %s547_s0, 1  ;;  %p76_p8 = scmp.eq.s32.totalorder %s316_s17, 1 }
  0x13   : > { %p351_p10 = scmp.lt.s32.totalorder %s503_s16, 2  ;;  %s96_s26 = sand.u32 1, %s499_s15  }
  0x14   : > { %p576_p11 = por %p70_p7, %p40_p0  ;;  %p580_p12 = por %p76_p8, %p46_p3 }
  0x15   : > { %s337_s27 = sshll.u32 %s503_s16, 4  ;;  %s319_s28 = sshll.u32 %s96_s26, 4 }
  0x16   : > { %s105_s3 = scalar_lea.hbm %s658_s1, %s337_s27  ;;  %s100_s5 = scalar_lea.vmem [#allocation4], %s319_s28 }
  0x17   : > { %s107_s4 = sshll.u32 %s105_s3, 4  ;;  %s109_s6 = sshll.u32 %s100_s5, 4  ;;  %s108_s4 = int_to_ptr.hbm [resolvable:$true] %s107_s4  ;;  %s110_s6 = int_to_ptr.vmem [resolvable:$true] %s109_s6 }
  0x18   : > { %p591_p13 = pnand %p351_p10, %p565_p5  ;;  %p322_p0 = scmp.ge.s32.totalorder %s503_s16, 1 }
  0x19   : > { %p114_p1 = scmp.lt.s32.totalorder %s503_s16, 3  ;;  %s97_s8 = scalar_lea.sflag [#allocation5], %s96_s26 }
  0x1a   : > { %s405_s9 = sshra.s32 %s108_s4, 4  ;;  %p409_p3 = pneg %p591_p13  ;;  %s406_s9 = int_to_ptr.hbm [resolvable:$true] %s405_s9 }
  0x1b   : > { %s407_s10 = scalar_lea.hbm %s406_s9, 16  ;;  %s412_s17 = scalar_lea.hbm %s658_s1, 32 }
  0x1c   : > { %p408_p2 = scmp.ne.s32.totalorder %s406_s9, %s407_s10  ;;  %p413_p5 = scmp.lt.s32.totalorder %s406_s9, %s658_s1 }
  0x1d   : > { %p414_p8 = scmp.lt.s32.totalorder %s412_s17, %s407_s10 }
  0x1e   : > { %p410_p4 = pnand %p409_p3, %p408_p2 }
  0x1f   : > { %p415_p10 = por %p414_p8, %p413_p5 }
  0x20   : > { %p411_p7 = pneg %p410_p4 }
  0x22   : > { %p416_p9 = pnand %p415_p10, %p411_p7 }
  0x24   : > { %419 = shalt.err (!%p416_p9)
}
  0x25   : > { %346 = dma.hbm_to_vmem [thread:$0]  (!%p591_p13), %s108_s4, 256, %s110_s6, %s97_s8  }
  0x26   : > { %p115_p2 = pnand %p322_p0, %p114_p1 }
  0x27   : > { %s612_s22 = sand.u32 (!%p115_p2), 1, %s495_s14  }
  0x28   : > { %118 = sbr.rel (%p115_p2) target bundleno = 443 (0x1bb), region = 24  ;;  %s323_s26 = sshll.u32 (!%p115_p2), %s612_s22, 4 }
  0x29   : > { %s121_s27 = scalar_lea.sflag (!%p115_p2), [#allocation5], %s612_s22  ;;  %s124_s28 = scalar_lea.vmem (!%p115_p2), [#allocation4], %s323_s26 }
  0x2d   : > { %482 = dma.done.wait (%p569_p6), %s121_s27, 256  }
  0x2e   : > { %484 = vsyncadd (%p569_p6), %s121_s27, 4294967040  ;;  %v144_v0 = vld [vmem:[%s124_s28] sm:$0xff]  ;;  %v145_v1 = vld [vmem:[%s124_s28 + $0x8] sm:$0xff]  ;;  %v150_v3 = vlaneseq  ;;  %s154_s29 = sld [smem:[#allocation3]]  ;;  %v506_v8 = vmov 0.0   ;;  %vm177_vm3 = vcmask 64512  }
  0x2f   : > { %v146_v2 = vadd.f32 %v145_v1, %v144_v0  ;;  %s326_s30 = sld [smem:[#allocation3 + $0x1]]  ;;  %v507_v22 = vmov 0   ;;  %s338_s23 = sshll.u32 %s547_s0, 4 }
  0x30   : > { %v151_v4 = vshrl.u32 %v150_v3, 7  ;;  %v153_v5 = vand.u32 127, %v150_v3  ;;  %s328_s3 = sld [smem:[#allocation3 + $0x2]]  ;;  %388 = vset.pattern.permute.xlu0 %v507_v22  ;;  %s241_s6 = scalar_lea.hbm %s659_s2, %s338_s23 }
  0x31   : > { %147 = vadd.xlane.f32.xlu0 %v146_v2  ;;  %s143_s7 = scalar_lea.vmem [#allocation7], %s323_s26  ;;  %s245_s9 = sshll.u32 %s241_s6, 4  ;;  %s246_s9 = int_to_ptr.hbm [resolvable:$true] %s245_s9 }
  0x32   : > { %v155_v6 = vadd.s32 4294967295, %v151_v4  ;;  %vm163_vm1 = vcmp.eq.s32.totalorder %v153_v5, %v151_v4  ;;  %v170_v7 = vadd.s32 1, %v151_v4  ;;  %s243_s8 = sshll.u32 %s143_s7, 4  ;;  %s230_s10 = scalar_lea.sflag [#allocation6], %s612_s22  ;;  %s244_s8 = int_to_ptr.vmem [resolvable:$true] %s243_s8 }
  0x33   : > { %v327_v11 = vsel %vm163_vm1, 1.0, %v506_v8  ;;  %s449_s11 = sshra.s32 %s246_s9, 4  ;;  %s455_s19 = scalar_lea.hbm %s659_s2, 32  ;;  %s450_s11 = int_to_ptr.hbm [resolvable:$true] %s449_s11 }
  0x34   : > { %vm156_vm0 = vcmp.eq.s32.totalorder %v153_v5, %v155_v6  ;;  %v159_v10 = vstv %s154_s29  ;;  %vm171_vm2 = vcmp.eq.s32.totalorder %v153_v5, %v170_v7  ;;  %s451_s0 = scalar_lea.hbm %s450_s11, 16  ;;  %p456_p0 = scmp.lt.s32.totalorder %s450_s11, %s659_s2 }
  0x35   : > { %v325_v9 = vsel %vm156_vm0, 1.0, %v506_v8  ;;  %v166_v12 = vstv %s326_s30  ;;  %v329_v15 = vsel %vm171_vm2, 1.0, %v506_v8  ;;  %p452_p6 = scmp.ne.s32.totalorder %s450_s11, %s451_s0  ;;  %p457_p1 = scmp.lt.s32.totalorder %s455_s19, %s451_s0 }
  0x36   : > { %v160_v13 = vmul.f32 %v325_v9, %v159_v10  ;;  %v167_v14 = vmul.f32 %v327_v11, %v166_v12  ;;  %v174_v16 = vstv %s328_s3 }
  0x37   : > { %v175_v18 = vmul.f32 %v329_v15, %v174_v16  ;;  %p453_p9 = pnand %p452_p6, %p576_p11  ;;  %p458_p3 = por %p457_p1, %p456_p0 }
  0x38   : > { %v168_v17 = vadd.f32 %v167_v14, %v160_v13 }
  0x39   : > { %p454_p13 = pneg %p453_p9 }
  0x3a   : > { %v176_v20 = vadd.f32 %v175_v18, %v168_v17 }
  0x3b   : > { %p459_p4 = pnand %p458_p3, %p454_p13 }
  0xa4   : > { %v148_v19 = vpop.xlane.xlu0 %147 }
  0xa5   : > { %v149_v21 = vmul.f32 0.00390625, %v148_v19 }
  0xa7   : > { %196 = vmatpush.msra.mxu0 %v149_v21 }
  0xa8   : > { %330 = vmatmul.msk.f32.vlgmr.msra.gmra.mxu0 %vm177_vm3, %v176_v20 }
 0x125   : > { %v198_v23 = vpop.f32.mrf.mxu0 }
 0x126   : > { %v331_v24 = vmul.f32 -1.442695, %v198_v23 }
 0x128   : > { %389 = vpow2.f32 %v331_v24 }
 0x12e   : > { %v390_v25 = vpop.eup %389 }
 0x12f   : > { %v204_v26 = vadd.f32 1.0, %v390_v25 }
 0x131   : > { %391 = vrcp.f32 %v204_v26  ;;  %v216_v30 = vand.u32 2147483648, %v204_v26  ;;  %v214_v32 = vand.u32 2147483647, %v204_v26  ;;  %vm210_vm5 = vweird.f32 %v204_v26 }
 0x133   : > { %v217_v34 = vor.u32 1.1754944e-38, %v216_v30  ;;  %vm215_vm7 = vcmp.eq.f32.partialorder %v214_v32, 8.507059e+37 }
 0x137   : > { %v392_v27 = vpop.eup %391 }
 0x138   : > { %v206_v28 = vmul.f32 %v392_v27, %v204_v26  ;;  %vm211_vm4 = vweird.f32 %v392_v27 }
 0x139   : > { %vm212_vm6 = vmor %vm210_vm5, %vm211_vm4 }
 0x13a   : > { %v207_v29 = vsub.f32 1.0, %v206_v28 }
 0x13c   : > { %v208_v31 = vmul.f32 %v392_v27, %v207_v29 }
 0x13e   : > { %v209_v33 = vadd.f32 %v392_v27, %v208_v31 }
 0x140   : > { %v213_v35 = vsel %vm212_vm6, %v392_v27, %v209_v33 }
 0x141   : > { %v218_v36 = vsel %vm215_vm7, %v217_v34, %v213_v35 }
 0x142   : > { %222 = vperm.xlu0 %388, %v218_v36  }
 0x1b4   : > { %v223_v37 = vpop.permute.xlu0 %222 }
 0x1b5   : > { %v225_v38 = vmul.f32 %v223_v37, %v144_v0  ;;  %v226_v39 = vmul.f32 %v223_v37, %v145_v1 }
 0x1b7   : > { %227 = vst [vmem:[%s143_s7] sm:$0xff] %v225_v38 }
 0x1b8   : > { %228 = vst [vmem:[%s143_s7 + $0x8] sm:$0xff] %v226_v39 }
 0x1b9   : > { %462 = shalt.err (!%p459_p4)
}
 0x1ba   : > { %341 = dma.vmem_to_hbm [thread:$0]  (%p576_p11), %s244_s8, 256, %s246_s9, %s230_s10  }
 0x1bb PF: > { %s257_s22 = sand.u32 1, %s491_s13   ;;  %p665_p7 = scmp.ge.s32.totalorder %s503_s16, 2 }
 0x1bc   : > { %s258_s27 = scalar_lea.sflag [#allocation6], %s257_s22 }
 0x1bd   : > { %p348_p5 = pnand %p665_p7, %p580_p12 }
 0x1bf   : > { %p349_p8 = pneg %p348_p5 }
 0x1c1   : > { %486 = dma.done.wait (%p349_p8), %s258_s27, 256  }
 0x1c2   : > { %488 = vsyncadd (%p349_p8), %s258_s27, 4294967040  ;;  %p23_p10 = scmp.ge.s32.totalorder %s551_s18, 4   ;;  %s666_s13 = smov %s495_s14 }
 0x1c3   : > { %s667_s14 = smov %s499_s15  ;;  %s668_s15 = smov %s563_s21 }
 0x1c4   : > { %s669_s16 = smov %s551_s18  ;;  %25 = sbr.rel (!%p23_p10) target bundleno = 11 (0xb), region = 69 }
 0x1c9   :  { %264 = vsyncpa [#allocation5], 1 }
 0x1ca   :  { %266 = vsyncpa [#allocation5 + $0x1], 1 }
 0x1cb   :  { %267 = vsyncpa [#allocation6], 1 }
 0x1cc   :  { %269 = vsyncpa [#allocation6 + $0x1], 1 }

</bundles_post_ra>
